<compile_context>
chip_gen: v6e
topology: v6e:2x2x1
jax: 0.10.0
libtpu: 0.0.40
codegen_flags: <defaults>
</compile_context>

<pallas_src>
from abc import ABC, abstractmethod
from typing import Any, Dict, List, Sequence

import jax
import jax.numpy as jnp
from jax import lax
from jax.experimental import pallas as pl
from jax.experimental.pallas import tpu as pltpu


_DEFAULT_MIN_PALLAS_BYTES = 256 * 1024  # below this, skip the custom call


# ----------------------------------------------------------------------------
# Pallas kernel: fused HBM->HBM identity copy of N arrays via async DMA.
# ----------------------------------------------------------------------------
def _make_fused_copy_kernel(n: int):
    """Build a kernel copying n HBM inputs to n HBM outputs with overlapped DMAs."""

    def kernel(*refs):
        in_refs = refs[:n]
        out_refs = refs[n:2 * n]
        sem = refs[2 * n]  # DMA semaphore array, shape (n,)
        copies = [
            pltpu.make_async_copy(in_refs[i], out_refs[i], sem.at[i])
            for i in range(n)
        ]
        for cp in copies:  # issue every DMA first so they overlap
            cp.start()
        for cp in copies:  # then drain
            cp.wait()

    return kernel


def fused_identity_copy(arrays: Sequence[jnp.ndarray]):
    """One pallas_call copying every array HBM->HBM via async DMA.

    No grid, no BlockSpec tiling, no VMEM staging: both in_specs and out_specs
    use memory_space=pl.ANY, so shapes (including ragged ones like (3, 5, 7))
    pass through untouched and the copy runs on the DMA engine.
    """
    arrays = list(arrays)
    n = len(arrays)
    if n == 0:
        return []

    total_bytes = sum(int(a.size) * jnp.dtype(a.dtype).itemsize for a in arrays)

    out = pl.pallas_call(
        _make_fused_copy_kernel(n),
        out_shape=tuple(jax.ShapeDtypeStruct(a.shape, a.dtype) for a in arrays),
        in_specs=[pl.BlockSpec(memory_space=pl.ANY) for _ in range(n)],
        out_specs=tuple(pl.BlockSpec(memory_space=pl.ANY) for _ in range(n)),
        scratch_shapes=[pltpu.SemaphoreType.DMA((n,))],
        cost_estimate=pl.CostEstimate(
            flops=0, transcendentals=0, bytes_accessed=2 * total_bytes
        ),
    )(*arrays)
    return list(out)


# ----------------------------------------------------------------------------
# JAX mirror of rising.transforms.abstract._AbstractTransform
# ----------------------------------------------------------------------------
class AbstractTransformJAX(ABC):
    """Base class for all transforms (JAX/Pallas version).

    The PyTorch base class carries no parameters; __init__ only stores the
    `grad` flag and any extra kwargs as attributes.
    """

    def __init__(self, *, grad: bool = False, **kwargs):
        self.grad = grad
        self._registered_samplers: List[str] = []
        for key, item in kwargs.items():
            setattr(self, key, item)

    def __call__(self, **data) -> Dict[str, Any]:
        # torch.enable_grad() / torch.no_grad() -> in functional JAX, grad=False
        # maps to stopping gradients on every array output.
        out = self.forward(**data)
        if not self.grad:
            out = {
                k: (lax.stop_gradient(v) if isinstance(v, jnp.ndarray) else v)
                for k, v in out.items()
            }
        return out

    @abstractmethod
    def forward(self, **data) -> Dict[str, Any]:
        raise NotImplementedError

    # TODO(synk): register_sampler / AbstractParameter dynamic-property
    # machinery is host-side Python metaprogramming with no device compute;
    # it is intentionally not reproduced on the kernel side.


class IdentityTransform(AbstractTransformJAX):
    """Minimal concrete transform: the base class contributes no compute of its
    own, so the canonical forward is an identity over the data dict, executed
    as ONE fused Pallas HBM->HBM DMA copy over every (large enough) array.
    """

    def __init__(self, *, grad: bool = False,
                 min_pallas_bytes: int = _DEFAULT_MIN_PALLAS_BYTES, **kwargs):
        super().__init__(grad=grad, **kwargs)
        self.min_pallas_bytes = min_pallas_bytes

    def forward(self, **data) -> Dict[str, Any]:
        # Decide per entry whether it goes through the fused kernel.
        kernel_keys = []
        kernel_arrays = []
        for key, value in data.items():
            if (
                isinstance(value, jnp.ndarray)
                and value.ndim > 0
                and value.size > 0
                and int(value.size) * jnp.dtype(value.dtype).itemsize
                >= self.min_pallas_bytes
            ):
                kernel_keys.append(key)
                kernel_arrays.append(value)

        copied = fused_identity_copy(kernel_arrays)
        copied_by_key = dict(zip(kernel_keys, copied))

        out: Dict[str, Any] = {}
        for key, value in data.items():
            if key in copied_by_key:
                out[key] = copied_by_key[key]
            else:
                # Small / empty / non-array entries: identity is the value
                # itself; a custom call would be pure overhead.
                out[key] = value
        return out


if __name__ == "__main__":
    key = jax.random.PRNGKey(0)
    k1, k2, k3, k4 = jax.random.split(key, 4)

    # NCHW data dict, small shapes (typical rising data/seg pair) plus a
    # ragged-shaped tensor and a bf16 tensor to exercise mixed dtypes.
    x = jax.random.normal(k1, (2, 4, 16, 16), dtype=jnp.float32)
    seg = jax.random.normal(k2, (2, 1, 16, 16), dtype=jnp.float32)
    odd = jax.random.normal(k3, (3, 5, 7), dtype=jnp.float32)
    mask = jax.random.normal(k4, (2, 4, 16, 16), dtype=jnp.float32).astype(jnp.bfloat16)

    # min_pallas_bytes=0 forces every array through the fused DMA kernel so
    # the Pallas path is exercised at these tiny demo shapes; production
    # callers should keep the default (small arrays bypass the custom call).
    transform = IdentityTransform(grad=False, min_pallas_bytes=0)
    result = transform(data=x, seg=seg, odd=odd, mask=mask, label="foo")

    y = jax.block_until_ready(result["data"])
    z = jax.block_until_ready(result["seg"])
    w = jax.block_until_ready(result["odd"])
    m = jax.block_until_ready(result["mask"])

    assert y.shape == x.shape and y.dtype == x.dtype
    assert z.shape == seg.shape and z.dtype == seg.dtype
    assert w.shape == odd.shape and w.dtype == odd.dtype
    assert m.shape == mask.shape and m.dtype == mask.dtype
    assert result["label"] == "foo"
    assert bool(jnp.array_equal(y, x))
    assert bool(jnp.array_equal(z, seg))
    assert bool(jnp.array_equal(w, odd))
    assert bool(jnp.array_equal(m, mask))

    # Also exercise the small-array bypass path (default threshold).
    transform_default = IdentityTransform(grad=False)
    result2 = transform_default(data=x, label=3)
    y2 = jax.block_until_ready(result2["data"])
    assert bool(jnp.array_equal(y2, x)) and result2["label"] == 3

    print("KERNEL_OK")
</pallas_src>

<mosaic_0001>
module attributes {stable_mosaic.version = 11 : i64} {
  func.func @kernel(%arg0: memref<2x4x16x16xf32, #tpu.memory_space<any>>, %arg1: memref<2x1x16x16xf32, #tpu.memory_space<any>>, %arg2: memref<3x5x7xf32, #tpu.memory_space<any>>, %arg3: memref<2x4x16x16xbf16, #tpu.memory_space<any>>, %arg4: memref<2x4x16x16xf32, #tpu.memory_space<any>>, %arg5: memref<2x1x16x16xf32, #tpu.memory_space<any>>, %arg6: memref<3x5x7xf32, #tpu.memory_space<any>>, %arg7: memref<2x4x16x16xbf16, #tpu.memory_space<any>>, %arg8: memref<4x!tpu.dma_semaphore, #tpu.memory_space<semaphore_mem>>) attributes {dimension_semantics = [], scalar_prefetch = 0 : i64, scratch_operands = 1 : i64, tpu.core_type = #tpu.core_type<tc>} {
    %c0_i32 = arith.constant 0 : i32
    %0 = tpu.memref_slice %arg8[%c0_i32] : memref<4x!tpu.dma_semaphore, #tpu.memory_space<semaphore_mem>> -> memref<1x!tpu.dma_semaphore, #tpu.memory_space<semaphore_mem>>
    %1 = tpu.memref_squeeze %0 : memref<1x!tpu.dma_semaphore, #tpu.memory_space<semaphore_mem>> -> memref<!tpu.dma_semaphore, #tpu.memory_space<semaphore_mem>>
    tpu.enqueue_dma source(%arg0 : memref<2x4x16x16xf32, #tpu.memory_space<any>>) target(%arg4 : memref<2x4x16x16xf32, #tpu.memory_space<any>>) target_semaphore(%1 : memref<!tpu.dma_semaphore, #tpu.memory_space<semaphore_mem>>)
    %c1_i32 = arith.constant 1 : i32
    %2 = tpu.memref_slice %arg8[%c1_i32] : memref<4x!tpu.dma_semaphore, #tpu.memory_space<semaphore_mem>> -> memref<1x!tpu.dma_semaphore, #tpu.memory_space<semaphore_mem>>
    %3 = tpu.memref_squeeze %2 : memref<1x!tpu.dma_semaphore, #tpu.memory_space<semaphore_mem>> -> memref<!tpu.dma_semaphore, #tpu.memory_space<semaphore_mem>>
    tpu.enqueue_dma source(%arg1 : memref<2x1x16x16xf32, #tpu.memory_space<any>>) target(%arg5 : memref<2x1x16x16xf32, #tpu.memory_space<any>>) target_semaphore(%3 : memref<!tpu.dma_semaphore, #tpu.memory_space<semaphore_mem>>)
    %c2_i32 = arith.constant 2 : i32
    %4 = tpu.memref_slice %arg8[%c2_i32] : memref<4x!tpu.dma_semaphore, #tpu.memory_space<semaphore_mem>> -> memref<1x!tpu.dma_semaphore, #tpu.memory_space<semaphore_mem>>
    %5 = tpu.memref_squeeze %4 : memref<1x!tpu.dma_semaphore, #tpu.memory_space<semaphore_mem>> -> memref<!tpu.dma_semaphore, #tpu.memory_space<semaphore_mem>>
    tpu.enqueue_dma source(%arg2 : memref<3x5x7xf32, #tpu.memory_space<any>>) target(%arg6 : memref<3x5x7xf32, #tpu.memory_space<any>>) target_semaphore(%5 : memref<!tpu.dma_semaphore, #tpu.memory_space<semaphore_mem>>)
    %c3_i32 = arith.constant 3 : i32
    %6 = tpu.memref_slice %arg8[%c3_i32] : memref<4x!tpu.dma_semaphore, #tpu.memory_space<semaphore_mem>> -> memref<1x!tpu.dma_semaphore, #tpu.memory_space<semaphore_mem>>
    %7 = tpu.memref_squeeze %6 : memref<1x!tpu.dma_semaphore, #tpu.memory_space<semaphore_mem>> -> memref<!tpu.dma_semaphore, #tpu.memory_space<semaphore_mem>>
    tpu.enqueue_dma source(%arg3 : memref<2x4x16x16xbf16, #tpu.memory_space<any>>) target(%arg7 : memref<2x4x16x16xbf16, #tpu.memory_space<any>>) target_semaphore(%7 : memref<!tpu.dma_semaphore, #tpu.memory_space<semaphore_mem>>)
    %c0_i32_0 = arith.constant 0 : i32
    %8 = tpu.memref_slice %arg8[%c0_i32_0] : memref<4x!tpu.dma_semaphore, #tpu.memory_space<semaphore_mem>> -> memref<1x!tpu.dma_semaphore, #tpu.memory_space<semaphore_mem>>
    %9 = tpu.memref_squeeze %8 : memref<1x!tpu.dma_semaphore, #tpu.memory_space<semaphore_mem>> -> memref<!tpu.dma_semaphore, #tpu.memory_space<semaphore_mem>>
    tpu.wait_dma2 semaphore(%9 : memref<!tpu.dma_semaphore, #tpu.memory_space<semaphore_mem>>) src(%arg0 : memref<2x4x16x16xf32, #tpu.memory_space<any>>) dst(%arg4 : memref<2x4x16x16xf32, #tpu.memory_space<any>>)
    %c1_i32_1 = arith.constant 1 : i32
    %10 = tpu.memref_slice %arg8[%c1_i32_1] : memref<4x!tpu.dma_semaphore, #tpu.memory_space<semaphore_mem>> -> memref<1x!tpu.dma_semaphore, #tpu.memory_space<semaphore_mem>>
    %11 = tpu.memref_squeeze %10 : memref<1x!tpu.dma_semaphore, #tpu.memory_space<semaphore_mem>> -> memref<!tpu.dma_semaphore, #tpu.memory_space<semaphore_mem>>
    tpu.wait_dma2 semaphore(%11 : memref<!tpu.dma_semaphore, #tpu.memory_space<semaphore_mem>>) src(%arg1 : memref<2x1x16x16xf32, #tpu.memory_space<any>>) dst(%arg5 : memref<2x1x16x16xf32, #tpu.memory_space<any>>)
    %c2_i32_2 = arith.constant 2 : i32
    %12 = tpu.memref_slice %arg8[%c2_i32_2] : memref<4x!tpu.dma_semaphore, #tpu.memory_space<semaphore_mem>> -> memref<1x!tpu.dma_semaphore, #tpu.memory_space<semaphore_mem>>
    %13 = tpu.memref_squeeze %12 : memref<1x!tpu.dma_semaphore, #tpu.memory_space<semaphore_mem>> -> memref<!tpu.dma_semaphore, #tpu.memory_space<semaphore_mem>>
    tpu.wait_dma2 semaphore(%13 : memref<!tpu.dma_semaphore, #tpu.memory_space<semaphore_mem>>) src(%arg2 : memref<3x5x7xf32, #tpu.memory_space<any>>) dst(%arg6 : memref<3x5x7xf32, #tpu.memory_space<any>>)
    %c3_i32_3 = arith.constant 3 : i32
    %14 = tpu.memref_slice %arg8[%c3_i32_3] : memref<4x!tpu.dma_semaphore, #tpu.memory_space<semaphore_mem>> -> memref<1x!tpu.dma_semaphore, #tpu.memory_space<semaphore_mem>>
    %15 = tpu.memref_squeeze %14 : memref<1x!tpu.dma_semaphore, #tpu.memory_space<semaphore_mem>> -> memref<!tpu.dma_semaphore, #tpu.memory_space<semaphore_mem>>
    tpu.wait_dma2 semaphore(%15 : memref<!tpu.dma_semaphore, #tpu.memory_space<semaphore_mem>>) src(%arg3 : memref<2x4x16x16xbf16, #tpu.memory_space<any>>) dst(%arg7 : memref<2x4x16x16xbf16, #tpu.memory_space<any>>)
    return
  }
}

</mosaic_0001>

<bundles_post_ra>
// kernel: tpu_custom_call.1
= control target key start
LH: loop header
LB: loop body
LE: loop exit
PB: predicated region body
PF: predicated region fallthrough
CT: control target
= control target key end

     0   :  { %s200_s27 = smov [#allocation2]   ;;  %s201_s28 = smov 131072   ;;  %s280_s0 = inlined_call_operand.hbm [shape: f32[2,4,16,16], index: 0, kind: input, shape index: {}]   ;;  %s281_s3 = inlined_call_operand.hbm [shape: bf16[2,4,16,16], index: 3, kind: input, shape index: {}]   ;;  %s282_s4 = inlined_call_operand.hbm [shape: f32[2,4,16,16], index: 4, kind: output, shape index: {0}]   ;;  %s283_s7 = inlined_call_operand.hbm [shape: bf16[2,4,16,16], index: 7, kind: output, shape index: {3}]   ;;  %s284_s1 = inlined_call_operand.vmem [shape: f32[2,1,16,16], index: 1, kind: input, shape index: {}]   ;;  %s285_s5 = inlined_call_operand.hbm [shape: f32[2,1,16,16], index: 5, kind: output, shape index: {1}]   ;;  %s286_s2 = inlined_call_operand.vmem [shape: f32[3,5,7], index: 2, kind: input, shape index: {}]   ;;  %s287_s6 = inlined_call_operand.vmem [shape: f32[3,5,7], index: 6, kind: output, shape index: {2}]  }
   0x1   :  { %s28_s26 = sshll.u32 %s284_s1, 4  ;;  %s202_s29 = smov 0   ;;  %s29_s26 = int_to_ptr.vmem [resolvable:$true] %s28_s26 }
   0x2   :  { %19 = dma.general %s280_s0, 2048, %s282_s4, %s200_s27, %s201_s28, [#allocation4], %s202_s29, 0  }
   0x3   :  { %s172_s11 = scalar_lea.vmem %s29_s26, 512  ;;  %p177_p1 = scmp.lt.s32.totalorder %s29_s26, %s29_s26 }
   0x4   :  { %p173_p0 = scmp.ne.s32.totalorder %s29_s26, %s172_s11  ;;  %p178_p2 = scmp.lt.s32.totalorder %s172_s11, %s172_s11 }
   0x6   :  { %p179_p3 = por %p178_p2, %p177_p1 }
   0x8   :  { %p180_p4 = pnand %p179_p3, %p173_p0 }
   0xa   :  { %183 = shalt.err (!%p180_p4)  }
   0xb   :  { %31 = dma.vmem_to_hbm [thread:$0]  %s29_s26, 512, %s285_s5, [#allocation2 + $0x1]  ;;  %v51_v0 = vld [vmem:[%s286_s2] sm:$0x1f]  ;;  %v53_v1 = vld [vmem:[%s286_s2 + $0x8] sm:$0x1f] }
   0xc   :  { %v55_v2 = vld [vmem:[%s286_s2 + $0x10] sm:$0x1f]  ;;  %52 = vst [vmem:[%s287_s6] sm:$0x1f] %v51_v0  ;;  %54 = vst [vmem:[%s287_s6 + $0x8] sm:$0x1f] %v53_v1 }
   0xd   :  { %56 = vst [vmem:[%s287_s6 + $0x10] sm:$0x1f] %v55_v2 }
   0xe   :  { %94 = vsyncadd [#allocation2 + $0x2], 240  ;;  %s203_s22 = smov [#allocation2 + $0x3]  }
   0xf   :  { %102 = dma.general %s281_s3, 1024, %s283_s7, %s203_s22, %s201_s28, [#allocation11], %s202_s29, 0  }
  0x10   :  { %192 = dma.done.wait [#allocation2], 2048 }
  0x11   :  { %193 = vsyncadd [#allocation2], 4294965248 }
  0x12   :  { %194 = dma.done.wait [#allocation2 + $0x1], 512 }
  0x13   :  { %195 = vsyncadd [#allocation2 + $0x1], 4294966784 }
  0x14   :  { %196 = dma.done.wait [#allocation2 + $0x2], 240 }
  0x15   :  { %197 = vsyncadd [#allocation2 + $0x2], 4294967056 }
  0x16   :  { %198 = dma.done.wait [#allocation2 + $0x3], 1024 }
  0x17   :  { %199 = vsyncadd [#allocation2 + $0x3], 4294966272 }
  0x18   :  { %123 = vsyncmov [#allocation2] }
  0x1b   :  { %s124_s2 = vpop.sfrf %123 }
  0x1c   :  { %p164_p5 = scmp.ne.s32.totalorder %s124_s2, 0 }
  0x1e   :  { %128 = shalt.err (%p164_p5)  }
  0x1f   :  { %130 = vsyncmov [#allocation2 + $0x1] }
  0x22   :  { %s131_s6 = vpop.sfrf %130 }
  0x23   :  { %p165_p6 = scmp.ne.s32.totalorder %s131_s6, 0 }
  0x25   :  { %135 = shalt.err (%p165_p6)  }
  0x26   :  { %137 = vsyncmov [#allocation2 + $0x2] }
  0x29   :  { %s138_s27 = vpop.sfrf %137 }
  0x2a   :  { %p166_p7 = scmp.ne.s32.totalorder %s138_s27, 0 }
  0x2c   :  { %142 = shalt.err (%p166_p7)  }
  0x2d   :  { %144 = vsyncmov [#allocation2 + $0x3] }
  0x30   :  { %s145_s3 = vpop.sfrf %144 }
  0x31   :  { %p167_p8 = scmp.ne.s32.totalorder %s145_s3, 0 }
  0x33   :  { %149 = shalt.err (%p167_p8)  }

</bundles_post_ra>
